<compile_context>
chip_gen: v7x
topology: tpu7x:2x2x1
jax: 0.10.0
libtpu: 0.0.40
codegen_flags: <defaults>
</compile_context>

<pallas_src>
import jax
import jax.numpy as jnp
from jax.experimental import pallas as pl
from jax.experimental.pallas import tpu as pltpu


def _round_up(x, m):
    return ((x + m - 1) // m) * m


def _bengio_fused_kernel(x_ref, w_ref, base_ref, out_ref):
    """One grid step = one tile of Mt rows of the flattened (B*T) axis.

    x_ref   : (Mt, Kp)  im2col'd sliding-window embeddings (zero-padded K)
    w_ref   : (Kp, Hp)  fused emb2h weights, W_0..W_{in_len-1} stacked along K
    base_ref: (Mt, Hp)  per-row additive term: ivec projection + all biases
    out_ref : (Mt, Hp)  tanh(x @ W + base)
    """
    acc = jnp.dot(x_ref[...], w_ref[...], preferred_element_type=jnp.float32)
    out_ref[...] = jnp.tanh(acc + base_ref[...]).astype(out_ref.dtype)


def bengio_forward(emb, ivec, w_stack, b_stack, w_iv, b_iv, *, in_len,
                   row_tile=256, compute_dtype=jnp.float32):
    """emb: (B, S, E) f32, ivec: (B, I) f32. Returns (B, T, H) f32.

    compute_dtype: set to jnp.bfloat16 on v6e/v7x for higher MXU throughput
    once the matmul is MXU-bound; f32 kept as default for bit-level checking.
    """
    B, S, E = emb.shape
    H = w_stack.shape[-1]
    T = S - in_len + 1
    assert T >= 1, "sequence too short for in_len"

    # --- glue (plain JAX): im2col sliding window + fused bias / ivec term ----
    # x_win[b, t, :] = concat(emb[b, t+0], emb[b, t+1], ..., emb[b, t+in_len-1])
    windows = [emb[:, i:i + T, :] for i in range(in_len)]            # in_len x (B,T,E)
    x_win = jnp.concatenate(windows, axis=-1).reshape(B * T, in_len * E)
    w_cat = w_stack.reshape(in_len * E, H)                           # matches concat order
    # ivec projection + all linear biases collapse into one per-row add
    base = ivec @ w_iv + b_iv + jnp.sum(b_stack, axis=0)             # (B, H)
    base = jnp.broadcast_to(base[:, None, :], (B, T, H)).reshape(B * T, H)

    # --- pad to MXU / lane-friendly shapes ------------------------------------
    M, K = x_win.shape
    Kp = _round_up(K, 128)                     # lane-dense K, zero-padded (no effect)
    Hp = _round_up(H, 128)                     # lane-dense output (unmasked vst)
    Mt = min(row_tile, _round_up(M, 8))        # sublane-aligned row tile
    Mp = _round_up(M, Mt)

    x_p = jnp.zeros((Mp, Kp), compute_dtype).at[:M, :K].set(x_win.astype(compute_dtype))
    w_p = jnp.zeros((Kp, Hp), compute_dtype).at[:K, :H].set(w_cat.astype(compute_dtype))
    base_p = jnp.zeros((Mp, Hp), jnp.float32).at[:M, :H].set(base)

    out = pl.pallas_call(
        _bengio_fused_kernel,
        out_shape=jax.ShapeDtypeStruct((Mp, Hp), jnp.float32),
        grid_spec=pltpu.PrefetchScalarGridSpec(
            num_scalar_prefetch=0,
            grid=(Mp // Mt,),
            in_specs=[
                pl.BlockSpec((Mt, Kp), lambda m: (m, 0)),    # im2col rows (tiled)
                pl.BlockSpec((Kp, Hp), lambda m: (0, 0)),    # fused weights (invariant)
                pl.BlockSpec((Mt, Hp), lambda m: (m, 0)),    # fused bias/ivec term
            ],
            out_specs=pl.BlockSpec((Mt, Hp), lambda m: (m, 0)),
        ),
        compiler_params=pltpu.CompilerParams(
            dimension_semantics=("parallel",)),
    )(x_p, w_p, base_p)

    return out[:M, :H].reshape(B, T, H)


def reference_forward(emb, ivec, w_stack, b_stack, w_iv, b_iv, *, in_len):
    """Pure-JAX reference mirroring the PyTorch forward."""
    B, S, E = emb.shape
    T = S - in_len + 1
    projs = []
    for i in range(in_len):
        x = emb[:, i:i + T, :]                                      # (B, T, E)
        projs.append(jnp.einsum('bte,eh->bth', x, w_stack[i]) + b_stack[i])
    iv_proj = ivec @ w_iv + b_iv                                    # (B, H)
    iv_proj = jnp.broadcast_to(iv_proj[:, None, :], (B, T, w_iv.shape[-1]))
    total = jnp.sum(jnp.stack(projs + [iv_proj], axis=-1), axis=-1)
    return jnp.tanh(total)


if __name__ == "__main__":
    # Module hyper-parameters (small, consistent with the forward pass)
    ntoken, emb_size, in_len, nb_hidden, dropout, ivec_dim = 50, 16, 3, 32, 0.0, 8
    batch, seq = 2, 8
    T = seq - in_len + 1

    key = jax.random.PRNGKey(0)
    keys = jax.random.split(key, 8)

    initrange = 0.1
    # encoder.weight ~ U(-0.1, 0.1)
    enc_weight = jax.random.uniform(keys[0], (ntoken, emb_size),
                                    minval=-initrange, maxval=initrange,
                                    dtype=jnp.float32)
    # emb2h[i].weight ~ U(-0.1, 0.1), stored transposed as (E, H)
    w_stack = jax.random.uniform(keys[1], (in_len, emb_size, nb_hidden),
                                 minval=-initrange, maxval=initrange,
                                 dtype=jnp.float32)
    lin_rng = 1.0 / jnp.sqrt(jnp.float32(emb_size))
    b_stack = jax.random.uniform(keys[2], (in_len, nb_hidden),
                                 minval=-lin_rng, maxval=lin_rng,
                                 dtype=jnp.float32)
    iv_rng = 1.0 / jnp.sqrt(jnp.float32(ivec_dim))
    w_iv = jax.random.uniform(keys[3], (ivec_dim, nb_hidden),
                              minval=-iv_rng, maxval=iv_rng, dtype=jnp.float32)
    b_iv = jax.random.uniform(keys[4], (nb_hidden,),
                              minval=-iv_rng, maxval=iv_rng, dtype=jnp.float32)

    # Inputs
    tokens = jax.random.randint(keys[5], (batch, seq), 0, ntoken)    # (B, S) int
    ivec = jax.random.normal(keys[6], (batch, ivec_dim), dtype=jnp.float32)
    hidden = jnp.zeros((1, batch, nb_hidden), dtype=jnp.float32)     # init_hidden (pass-through)

    # Embedding lookup (glue, plain JAX) then fused Pallas hot path.
    # TODO(synk): dropout is identity here (eval mode); training-mode dropout not implemented.
    emb = enc_weight[tokens]                                         # (B, S, E)

    out = bengio_forward(emb, ivec, w_stack, b_stack, w_iv, b_iv, in_len=in_len)
    out = jax.block_until_ready(out)

    # Forward returns (output, hidden); hidden passes through unchanged.
    ref = reference_forward(emb, ivec, w_stack, b_stack, w_iv, b_iv, in_len=in_len)
    assert out.shape == (batch, T, nb_hidden)
    assert jnp.allclose(out, ref, atol=1e-5, rtol=1e-5), "mismatch vs reference"

    print("KERNEL_OK")
</pallas_src>

<mosaic_0001>
module attributes {stable_mosaic.version = 11 : i64} {
  func.func @_bengio_fused_kernel(%arg0: i32, %arg1: memref<16x128xf32, #tpu.memory_space<vmem>>, %arg2: memref<128x128xf32, #tpu.memory_space<vmem>>, %arg3: memref<16x128xf32, #tpu.memory_space<vmem>>, %arg4: memref<16x128xf32, #tpu.memory_space<vmem>>) attributes {dimension_semantics = [#tpu.dimension_semantics<parallel>], iteration_bounds = array<i64: 1>, scalar_prefetch = 0 : i64, scratch_operands = 0 : i64, tpu.core_type = #tpu.core_type<tc>, window_params = [{transform_indices = @transform_0, window_bounds = array<i64: 16, 128>}, {pipeline_mode = #tpu.pipeline_mode<synchronous>, transform_indices = @transform_1, window_bounds = array<i64: 128, 128>}, {transform_indices = @transform_2, window_bounds = array<i64: 16, 128>}, {transform_indices = @transform_3, window_bounds = array<i64: 16, 128>}]} {
    %c0 = arith.constant 0 : index
    %c0_0 = arith.constant 0 : index
    %0 = vector.load %arg1[%c0, %c0_0] : memref<16x128xf32, #tpu.memory_space<vmem>>, vector<16x128xf32>
    %c0_1 = arith.constant 0 : index
    %c0_2 = arith.constant 0 : index
    %1 = vector.load %arg2[%c0_1, %c0_2] : memref<128x128xf32, #tpu.memory_space<vmem>>, vector<128x128xf32>
    %cst = arith.constant dense<0.000000e+00> : vector<16x128xf32>
    %2 = tpu.matmul %0, %1, %cst {dimension_numbers = #tpu.dot_dimension_numbers<[1], [0], [0], [1], [0, 0, 1, 1], [], []>} : vector<16x128xf32>, vector<128x128xf32>, vector<16x128xf32> -> vector<16x128xf32>
    %c0_3 = arith.constant 0 : index
    %c0_4 = arith.constant 0 : index
    %3 = vector.load %arg3[%c0_3, %c0_4] : memref<16x128xf32, #tpu.memory_space<vmem>>, vector<16x128xf32>
    %4 = arith.addf %2, %3 : vector<16x128xf32>
    %5 = math.tanh %4 : vector<16x128xf32>
    %c0_5 = arith.constant 0 : index
    %c0_6 = arith.constant 0 : index
    %6 = vector.load %arg4[%c0_5, %c0_6] : memref<16x128xf32, #tpu.memory_space<vmem>>, vector<16x128xf32>
    tpu.vector_store %arg4[%c0_5, %c0_6], %5 {strides = array<i32>} : memref<16x128xf32, #tpu.memory_space<vmem>>, vector<16x128xf32>,
    return
  }
  func.func @transform_0(%arg0: i32) -> (i32, i32) {
    %c0_i32 = arith.constant 0 : i32
    %c0_i32_0 = arith.constant 0 : i32
    return %arg0, %c0_i32 : i32, i32
  }
  func.func @transform_1(%arg0: i32) -> (i32, i32) {
    %c0_i32 = arith.constant 0 : i32
    %c0_i32_0 = arith.constant 0 : i32
    %c0_i32_1 = arith.constant 0 : i32
    return %c0_i32, %c0_i32_0 : i32, i32
  }
  func.func @transform_2(%arg0: i32) -> (i32, i32) {
    %c0_i32 = arith.constant 0 : i32
    %c0_i32_0 = arith.constant 0 : i32
    return %arg0, %c0_i32 : i32, i32
  }
  func.func @transform_3(%arg0: i32) -> (i32, i32) {
    %c0_i32 = arith.constant 0 : i32
    %c0_i32_0 = arith.constant 0 : i32
    return %arg0, %c0_i32 : i32, i32
  }
}

</mosaic_0001>

<bundles_post_ra>
// kernel: tpu_custom_call.1
= control target key start
LH: loop header
LB: loop body
LE: loop exit
PB: predicated region body
PF: predicated region fallthrough
CT: control target
= control target key end

     0   :  { %8 = vsyncpa [#allocation3], 0  ;;  %s455_s0 = inlined_call_operand.hbm [shape: f32[16,128], index: 0, kind: input, shape index: {}]   ;;  %s456_s1 = inlined_call_operand.hbm [shape: f32[128,128], index: 1, kind: input, shape index: {}]   ;;  %s457_s2 = inlined_call_operand.hbm [shape: f32[16,128], index: 2, kind: input, shape index: {}]   ;;  %s458_s3 = inlined_call_operand.hbm [shape: f32[16,128], index: 3, kind: output, shape index: {}]  }
   0x1   :  { %9 = vsyncpa [#allocation6], 0 }
   0x2   :  { %10 = vsyncpa [#allocation4], 0  ;;  %s362_s12 = smov [#allocation5]   ;;  %s363_s14 = smov [#allocation2]  }
   0x3   :  { %s28_s13 = sshll.u32 %s362_s12, 4  ;;  %s16_s15 = sshll.u32 %s363_s14, 4  ;;  %s29_s13 = int_to_ptr.vmem [resolvable:$true] %s28_s13  ;;  %s388_s15 = int_to_ptr.vmem [resolvable:$true] %s16_s15 }
   0x4   :  { %s268_s18 = scalar_lea.hbm %s456_s1, 2048 }
   0x5   :  { %p269_p0 = scmp.ne.s32.totalorder %s456_s1, %s268_s18  ;;  %p272_p1 = scmp.lt.u32.totalorder %s268_s18, %s456_s1 }
   0x7   :  { %p274_p2 = pnand %p272_p1, %p269_p0 }
   0x9   :  { %277 = shalt.err (!%p274_p2)
}
   0xa   :  { %s278_s23 = scalar_lea.vmem %s29_s13, 2048  ;;  %p283_p4 = scmp.lt.s32.totalorder %s29_s13, %s29_s13 }
   0xb   :  { %p279_p3 = scmp.ne.s32.totalorder %s29_s13, %s278_s23  ;;  %p284_p5 = scmp.lt.s32.totalorder %s278_s23, %s278_s23 }
   0xd   :  { %p285_p6 = por %p284_p5, %p283_p4 }
   0xf   :  { %p286_p7 = pnand %p285_p6, %p279_p3 }
  0x11   :  { %289 = shalt.err (!%p286_p7)
}
  0x12   :  { %s364_s24 = smov 128   ;;  %s365_s25 = smov 8  }
  0x13   :  { %34 = dma.hbm_to_vmem [thread:$0]  %s456_s1, 2048, %s29_s13, [#allocation6], %s364_s24, %s364_s24, %s365_s25  }
  0x14   :  { %s290_s30 = scalar_lea.hbm %s455_s0, 256 }
  0x15   :  { %p291_p8 = scmp.ne.s32.totalorder %s455_s0, %s290_s30  ;;  %p294_p9 = scmp.lt.u32.totalorder %s290_s30, %s455_s0 }
  0x17   :  { %p296_p10 = pnand %p294_p9, %p291_p8 }
  0x19   :  { %299 = shalt.err (!%p296_p10)
}
  0x1a   :  { %s300_s8 = scalar_lea.vmem %s388_s15, 256  ;;  %p305_p12 = scmp.lt.s32.totalorder %s388_s15, %s388_s15 }
  0x1b   :  { %p301_p11 = scmp.ne.s32.totalorder %s388_s15, %s300_s8  ;;  %p306_p13 = scmp.lt.s32.totalorder %s300_s8, %s300_s8 }
  0x1d   :  { %p307_p0 = por %p306_p13, %p305_p12 }
  0x1f   :  { %p308_p1 = pnand %p307_p0, %p301_p11 }
  0x21   :  { %311 = shalt.err (!%p308_p1)
}
  0x22   :  { %22 = dma.hbm_to_vmem [thread:$0]  %s455_s0, 256, %s388_s15, [#allocation3], %s364_s24, %s364_s24, %s365_s25  }
  0x23   :  { %s366_s10 = smov [#allocation7]   ;;  %s312_s14 = scalar_lea.hbm %s457_s2, 256 }
  0x24   :  { %s40_s11 = sshll.u32 %s366_s10, 4  ;;  %p313_p2 = scmp.ne.s32.totalorder %s457_s2, %s312_s14  ;;  %s41_s11 = int_to_ptr.vmem [resolvable:$true] %s40_s11 }
  0x25   :  { %p316_p3 = scmp.lt.u32.totalorder %s312_s14, %s457_s2 }
  0x27   :  { %p318_p4 = pnand %p316_p3, %p313_p2 }
  0x29   :  { %321 = shalt.err (!%p318_p4)
}
  0x2a   :  { %s322_s20 = scalar_lea.vmem %s41_s11, 256  ;;  %p327_p6 = scmp.lt.s32.totalorder %s41_s11, %s41_s11 }
  0x2b   :  { %p323_p5 = scmp.ne.s32.totalorder %s41_s11, %s322_s20  ;;  %p328_p7 = scmp.lt.s32.totalorder %s322_s20, %s322_s20 }
  0x2d   :  { %p329_p8 = por %p328_p7, %p327_p6 }
  0x2f   :  { %p330_p9 = pnand %p329_p8, %p323_p5 }
  0x31   :  { %333 = shalt.err (!%p330_p9)
}
  0x32   :  { %46 = dma.hbm_to_vmem [thread:$0]  %s457_s2, 256, %s41_s11, [#allocation6], %s364_s24, %s364_s24, %s365_s25  }
  0x33   :  { %356 = dma.done.wait [#allocation3], 256  }
  0x34   :  { %357 = vsyncadd [#allocation3], 4294967040 }
  0x35   :  { %358 = dma.done.wait [#allocation6], 2304  }
  0x36   :  { %359 = vsyncadd [#allocation6], 4294964992  ;;  %v58_v0 = vld [vmem:[#allocation5] sm:$0xff]  ;;  %v59_v1 = vld [vmem:[#allocation5 + $0x8] sm:$0xff]  ;;  %s367_s2 = smov [#allocation8]  }
  0x37   :  { %v60_v2 = vld [vmem:[#allocation5 + $0x10] sm:$0xff]  ;;  %v226_v3 = vpack.c.bf16 %v59_v1, %v58_v0  ;;  %v61_v4 = vld [vmem:[#allocation5 + $0x18] sm:$0xff]  ;;  %v62_v6 = vld [vmem:[#allocation5 + $0x20] sm:$0xff]  ;;  %s160_s21 = sshll.u32 %s367_s2, 4  ;;  %s161_s21 = int_to_ptr.vmem [resolvable:$true] %s160_s21 }
  0x38   :  { %v230_v5 = vpack.c.bf16 %v61_v4, %v60_v2  ;;  %v63_v7 = vld [vmem:[#allocation5 + $0x28] sm:$0xff]  ;;  %v56_v9 = vld [vmem:[#allocation2] sm:$0xff]  ;;  %v65_v11 = vld [vmem:[#allocation5 + $0x38] sm:$0xff]  ;;  %s334_s22 = scalar_lea.vmem %s161_s21, 256  ;;  %p339_p11 = scmp.lt.s32.totalorder %s161_s21, %s161_s21 }
  0x39   :  { %227 = vmatprep.subr.bf16.mxu0 %v226_v3  ;;  %v234_v8 = vpack.c.bf16 %v63_v7, %v62_v6  ;;  %v64_v10 = vld [vmem:[#allocation5 + $0x30] sm:$0xff]  ;;  %223 = vmatprep.mubr.f32.mxu0 %v56_v9  ;;  %v66_v13 = vld [vmem:[#allocation5 + $0x40] sm:$0xff]  ;;  %v67_v14 = vld [vmem:[#allocation5 + $0x48] sm:$0xff]  ;;  %p335_p10 = scmp.ne.s32.totalorder %s161_s21, %s334_s22  ;;  %p340_p12 = scmp.lt.s32.totalorder %s334_s22, %s334_s22 }
  0x3a   :  { %229 = vmatpush3.bf16.msra.mxu0 %v226_v3  ;;  %v238_v12 = vpack.c.bf16 %v65_v11, %v64_v10  ;;  %v242_v15 = vpack.c.bf16 %v67_v14, %v66_v13  ;;  %v68_v16 = vld [vmem:[#allocation5 + $0x50] sm:$0xff]  ;;  %v69_v17 = vld [vmem:[#allocation5 + $0x58] sm:$0xff]  ;;  %v70_v19 = vld [vmem:[#allocation5 + $0x60] sm:$0xff] }
  0x3b   :  { %231 = vmatprep.subr.bf16.mxu0 %v230_v5  ;;  %v246_v18 = vpack.c.bf16 %v69_v17, %v68_v16  ;;  %v71_v20 = vld [vmem:[#allocation5 + $0x68] sm:$0xff]  ;;  %v72_v22 = vld [vmem:[#allocation5 + $0x70] sm:$0xff]  ;;  %v73_v23 = vld [vmem:[#allocation5 + $0x78] sm:$0xff]  ;;  %p341_p13 = por %p340_p12, %p339_p11 }
  0x3c   :  { %v250_v21 = vpack.c.bf16 %v71_v20, %v70_v19  ;;  %v254_v24 = vpack.c.bf16 %v73_v23, %v72_v22  ;;  %v57_v25 = vld [vmem:[#allocation2 + $0x8] sm:$0xff]  ;;  %v75_v26 = vld [vmem:[#allocation7 + $0x8] sm:$0xff]  ;;  %v74_v27 = vld [vmem:[#allocation7] sm:$0xff] }
  0x3d   :  { %p342_p0 = pnand %p341_p13, %p335_p10 }
  0x3e   :  { %233 = vmatpush3.bf16.msra.mxu0 %v230_v5 }
  0x3f   :  { %235 = vmatprep.subr.bf16.mxu0 %v234_v8 }
  0x42   :  { %237 = vmatpush3.bf16.msra.mxu0 %v234_v8 }
  0x43   :  { %239 = vmatprep.subr.bf16.mxu0 %v238_v12 }
  0x46   :  { %241 = vmatpush3.bf16.msra.mxu0 %v238_v12 }
  0x47   :  { %243 = vmatprep.subr.bf16.mxu0 %v242_v15 }
  0x4a   :  { %245 = vmatpush3.bf16.msra.mxu0 %v242_v15 }
  0x4b   :  { %247 = vmatprep.subr.bf16.mxu0 %v246_v18 }
  0x4e   :  { %249 = vmatpush3.bf16.msra.mxu0 %v246_v18 }
  0x4f   :  { %251 = vmatprep.subr.bf16.mxu0 %v250_v21 }
  0x52   :  { %253 = vmatpush3.bf16.msra.mxu0 %v250_v21 }
  0x53   :  { %255 = vmatprep.subr.bf16.mxu0 %v254_v24 }
  0x56   :  { %257 = vmatpush3.bf16.msra.mxu0 %v254_v24 }
  0x59   :  { %224 = vmatmul.mubr.f32.vlgmr.msra.gmra.mrb[0].mxu0 %v57_v25 }
 0x12c   :  { %v225_v28 = vpop.f32.mrb[0].mxu0 }
 0x12d   :  { %v148_v29 = vadd.f32 %v225_v28, %v75_v26  ;;  %v142_v30 = vpop.f32.mrb[1].mxu0 }
 0x12e   :  { %v143_v31 = vadd.f32 %v142_v30, %v74_v27 }
 0x12f   :  { %264 = vtanh.f32 %v148_v29 }
 0x130   :  { %266 = vtanh.f32 %v143_v31 }
 0x139   :  { %v265_v32 = vpop.eup %264 }
 0x13a   :  { %v267_v33 = vpop.eup %266  ;;  %154 = vst [vmem:[#allocation8 + $0x8] sm:$0xff] %v265_v32 }
 0x13b   :  { %153 = vst [vmem:[#allocation8] sm:$0xff] %v267_v33 }
 0x13c   :  { %345 = shalt.err (!%p342_p0)
}
 0x13d   :  { %s346_s27 = scalar_lea.hbm %s458_s3, 256 }
 0x13e   :  { %p347_p1 = scmp.ne.s32.totalorder %s458_s3, %s346_s27  ;;  %p350_p2 = scmp.lt.u32.totalorder %s346_s27, %s458_s3 }
 0x140   :  { %p352_p3 = pnand %p350_p2, %p347_p1 }
 0x142   :  { %355 = shalt.err (!%p352_p3)
}
 0x143   :  { %166 = dma.vmem_to_hbm [thread:$0]  %s161_s21, 256, %s458_s3, [#allocation4], %s364_s24, %s364_s24, %s365_s25  }
 0x144   :  { %360 = dma.done.wait [#allocation4], 256  }
 0x145   :  { %361 = vsyncadd [#allocation4], 4294967040 }
 0x146   :  { %170 = vsyncpa [#allocation3], 1 }
 0x147   :  { %171 = vsyncpa [#allocation6], 1 }
 0x148   :  { %172 = vsyncpa [#allocation4], 1 }

</bundles_post_ra>
